<compile_context>
chip_gen: v6e
topology: v6e:2x2x1
jax: 0.10.0
libtpu: 0.0.40
codegen_flags: <defaults>
</compile_context>

<pallas_src>
import jax
import jax.numpy as jnp
from jax.experimental import pallas as pl
from jax.experimental.pallas import tpu as pltpu

BN_EPS = 1e-5


# ----------------------------- Pallas kernel ------------------------------ #
def _make_fused_kernel(N, H, W, Cin, C1, R):
    """Fused (conv3x3 + BN(train) + ReLU) x2 for static shapes.

    All activations use the padded-row layout: each image occupies Hp = H+2
    rows [zero, img_0..img_{H-1}, zero]; rows N*Hp..R-1 are extra zero rows
    that round R up to a sublane multiple.
    """
    Hp = H + 2
    WC1 = W * C1
    inv_m = 1.0 / float(N * H * W)      # BN population size per channel

    assert W & (W - 1) == 0, "log-step lane fold/broadcast assumes power-of-2 W"
    steps = []
    k = C1
    while k < WC1:
        steps.append(k)
        k *= 2

    def fold_groups(t):
        # t: (1, WC1).  After the log-step adds, lanes 0..C1-1 hold the sum
        # over the W lane-groups (per-channel totals); other lanes are junk.
        for s in steps:
            t = t + pltpu.roll(t, shift=WC1 - s, axis=1)   # t[l] += t[l + s]
        return t

    def bcast_groups(t):
        # t: (1, WC1) with real data in lanes 0..C1-1 and zeros elsewhere.
        # Duplicates lanes 0..C1-1 into every group of C1 lanes.
        for s in steps:
            t = t + pltpu.roll(t, shift=s, axis=1)         # t[l] += t[l - s]
        return t

    def conv3x3(lhs_bf16, w_ref, mask):
        # lhs_bf16: (R, K) bf16 in padded-row layout; w_ref: (3, K, WC1) bf16
        # with the kw taps / width padding folded in.
        # out[p] = sum_kh (lhs @ w[kh])[p - 1 + kh]; the row shifts are f32
        # sublane rolls of the per-kh MXU results (no unaligned slices).
        acc = jnp.dot(lhs_bf16, w_ref[1], preferred_element_type=jnp.float32)
        y0 = jnp.dot(lhs_bf16, w_ref[0], preferred_element_type=jnp.float32)
        acc = acc + pltpu.roll(y0, shift=1, axis=0)        # acc[p] += y0[p-1]
        y2 = jnp.dot(lhs_bf16, w_ref[2], preferred_element_type=jnp.float32)
        acc = acc + pltpu.roll(y2, shift=R - 1, axis=0)    # acc[p] += y2[p+1]
        return acc * mask                                  # zero the pad rows

    def bn_relu(acc_m, g_l, b_l, lane_keep):
        # acc_m: (R, WC1) f32 with pad rows already zeroed -> one-pass stats.
        # TODO(synk): one-pass E[x^2]-E[x]^2 can cancel for large M / large
        # means; use two-pass or Welford stats in the gridded/scaled version.
        colsum = jnp.sum(acc_m, axis=0, keepdims=True)          # (1, WC1)
        colsq = jnp.sum(acc_m * acc_m, axis=0, keepdims=True)   # (1, WC1)
        csum = fold_groups(colsum)                  # per-channel in lanes 0..C1-1
        csq = fold_groups(colsq)
        mean = csum * inv_m
        var = csq * inv_m - mean * mean                         # biased
        inv = jax.lax.rsqrt(var + BN_EPS)                       # EUP, no divide
        mean_b = bcast_groups(jnp.where(lane_keep, mean, 0.0))  # (1, WC1)
        inv_b = bcast_groups(jnp.where(lane_keep, inv, 0.0))
        scale_l = g_l * inv_b                                   # gamma * inv
        shift_l = b_l - mean_b * scale_l                        # beta - mean*scale
        return jnp.maximum(acc_m * scale_l + shift_l, 0.0)

    def kernel(x_ref, w1_ref, w2_ref, g1_ref, b1_ref, g2_ref, b2_ref,
               mask_ref, o_ref):
        mask = mask_ref[...]                                    # (R, 1) f32
        lane = jax.lax.broadcasted_iota(jnp.int32, (1, WC1), 1)
        lane_keep = lane < C1

        # ---------------- layer 1 ------------------------------------------ #
        acc1 = conv3x3(x_ref[...], w1_ref, mask)                # (R, WC1) f32
        # Trailing *mask re-zeroes the pad rows: they ARE layer 2's height pad.
        a1 = bn_relu(acc1, g1_ref[...], b1_ref[...], lane_keep) * mask

        # ---------------- layer 2 (a1 never leaves VMEM) -------------------- #
        acc2 = conv3x3(a1.astype(jnp.bfloat16), w2_ref, mask)
        o_ref[...] = bn_relu(acc2, g2_ref[...], b2_ref[...],
                             lane_keep).astype(o_ref.dtype)

    return kernel


# ------------------------------ JAX glue ----------------------------------- #
def _banded_weights(w_hwio, W, dtype=jnp.bfloat16):
    """Fold the kw taps (and the width zero padding) of a 3x3 HWIO kernel into
    three (W*Cin, W*Cout) block-banded matrices, one per kh tap."""
    KH, KW, Cin, Cout = w_hwio.shape
    win = jnp.arange(W)
    wout = jnp.arange(W)
    kw = jnp.arange(KW)
    # sel[kw, win, wout] = 1 iff input column win feeds output column wout via
    # tap kw (win == wout - 1 + kw); out-of-range taps are dropped, which IS
    # the zero padding along width.
    sel = (win[None, :, None] == (wout[None, None, :] - 1 + kw[:, None, None]))
    sel = sel.astype(w_hwio.dtype)
    t = jnp.einsum("kvw,hkio->hviwo", sel, w_hwio)       # (KH, W, Cin, W, Cout)
    return t.reshape(KH, W * Cin, W * Cout).astype(dtype)


@jax.jit
def conv_block_2d(x_nchw, params):
    """ConvBlock2d.forward: (conv3x3 -> BN(train) -> ReLU) x2, NCHW in/out."""
    N, Cin, H, W = x_nchw.shape
    C1 = params["w1"].shape[-1]
    Hp = H + 2
    R = ((N * Hp + 7) // 8) * 8                  # round rows up to sublanes

    # Layout plumbing (tiny here): NCHW -> NHWC, pad height only (width pad is
    # folded into the weights), flatten to the padded-row slab, ship as bf16.
    x = jnp.transpose(x_nchw, (0, 2, 3, 1)).astype(jnp.float32)
    xp = jnp.pad(x, ((0, 0), (1, 1), (0, 0), (0, 0)))            # (N, Hp, W, Cin)
    x2 = xp.reshape(N * Hp, W * Cin)
    x2 = jnp.pad(x2, ((0, R - N * Hp), (0, 0))).astype(jnp.bfloat16)

    w1 = _banded_weights(params["w1"], W)                        # (3, W*Cin, W*C1)
    w2 = _banded_weights(params["w2"], W)                        # (3, W*C1,  W*C1)
    # gamma/beta pre-broadcast to the (1, W*C1) lane layout (channel minor).
    g1 = jnp.tile(params["g1"].reshape(1, C1), (1, W)).astype(jnp.float32)
    b1 = jnp.tile(params["be1"].reshape(1, C1), (1, W)).astype(jnp.float32)
    g2 = jnp.tile(params["g2"].reshape(1, C1), (1, W)).astype(jnp.float32)
    b2 = jnp.tile(params["be2"].reshape(1, C1), (1, W)).astype(jnp.float32)
    # NOTE: conv biases params["b1"]/["b2"] are NOT passed: training-mode BN
    # subtracts the batch mean of (conv + bias), so they cancel exactly.

    # Row-validity mask: 1.0 on real image rows, 0.0 on the per-image zero-pad
    # rows and on the sublane-rounding tail rows.
    row = jnp.arange(R)
    valid = (row < N * Hp) & ((row % Hp) >= 1) & ((row % Hp) <= H)
    mask = valid.astype(jnp.float32).reshape(R, 1)

    kernel = _make_fused_kernel(N, H, W, Cin, C1, R)
    out2d = pl.pallas_call(
        kernel,
        out_shape=jax.ShapeDtypeStruct((R, W * C1), jnp.float32),
        in_specs=[pl.BlockSpec(memory_space=pltpu.MemorySpace.VMEM)] * 8,
        out_specs=pl.BlockSpec(memory_space=pltpu.MemorySpace.VMEM),
    )(x2, w1, w2, g1, b1, g2, b2, mask)

    out = out2d[:N * Hp].reshape(N, Hp, W, C1)[:, 1:H + 1]       # drop pad rows
    return jnp.transpose(out, (0, 3, 1, 2)).astype(x_nchw.dtype)


# --------------------------- pure-JAX reference ----------------------------- #
def _ref_layer(x_nchw, w_hwio, bias, gamma, beta):
    w_oihw = jnp.transpose(w_hwio, (3, 2, 0, 1))
    y = jax.lax.conv_general_dilated(
        x_nchw, w_oihw, window_strides=(1, 1), padding=((1, 1), (1, 1)),
        dimension_numbers=("NCHW", "OIHW", "NCHW"),
        precision=jax.lax.Precision.HIGHEST,
    )
    y = y + bias.reshape(1, -1, 1, 1)
    mean = jnp.mean(y, axis=(0, 2, 3), keepdims=True)
    var = jnp.mean(jnp.square(y - mean), axis=(0, 2, 3), keepdims=True)
    y = (y - mean) / jnp.sqrt(var + BN_EPS)
    y = y * gamma.reshape(1, -1, 1, 1) + beta.reshape(1, -1, 1, 1)
    return jnp.maximum(y, 0.0)


def _ref_conv_block(x_nchw, params):
    y = _ref_layer(x_nchw, params["w1"], params["b1"], params["g1"], params["be1"])
    y = _ref_layer(y, params["w2"], params["b2"], params["g2"], params["be2"])
    return y


# ---------------------------------- main ----------------------------------- #
if __name__ == "__main__":
    N, in_ch, out_ch, H, W = 2, 4, 8, 16, 16

    key = jax.random.PRNGKey(0)
    kx, kw1, kb1, kw2, kb2 = jax.random.split(key, 5)

    x = jax.random.normal(kx, (N, in_ch, H, W), jnp.float32)

    params = {
        # conv weights stored HWIO (kh, kw, Cin, Cout)
        "w1": jax.random.normal(kw1, (3, 3, in_ch, out_ch), jnp.float32) * 0.2,
        "b1": jax.random.normal(kb1, (out_ch,), jnp.float32) * 0.1,
        "g1": jnp.ones((out_ch,), jnp.float32),     # BN gamma (fresh init)
        "be1": jnp.zeros((out_ch,), jnp.float32),   # BN beta  (fresh init)
        "w2": jax.random.normal(kw2, (3, 3, out_ch, out_ch), jnp.float32) * 0.2,
        "b2": jax.random.normal(kb2, (out_ch,), jnp.float32) * 0.1,
        "g2": jnp.ones((out_ch,), jnp.float32),
        "be2": jnp.zeros((out_ch,), jnp.float32),
    }

    out = jax.block_until_ready(conv_block_2d(x, params))
    ref = jax.block_until_ready(_ref_conv_block(x, params))

    assert out.shape == (N, out_ch, H, W), out.shape
    # bf16 MXU operands (f32 accumulation) vs f32 HIGHEST reference.
    err = float(jnp.max(jnp.abs(out - ref)))
    assert jnp.allclose(out, ref, atol=2e-2, rtol=1e-2), err

    print("KERNEL_OK")
</pallas_src>

<mosaic_0001>
module attributes {stable_mosaic.version = 11 : i64} {
  func.func @kernel(%arg0: memref<40x64xbf16, #tpu.memory_space<vmem>>, %arg1: memref<3x64x128xbf16, #tpu.memory_space<vmem>>, %arg2: memref<3x128x128xbf16, #tpu.memory_space<vmem>>, %arg3: memref<1x128xf32, #tpu.memory_space<vmem>>, %arg4: memref<1x128xf32, #tpu.memory_space<vmem>>, %arg5: memref<1x128xf32, #tpu.memory_space<vmem>>, %arg6: memref<1x128xf32, #tpu.memory_space<vmem>>, %arg7: memref<40x1xf32, #tpu.memory_space<vmem>>, %arg8: memref<40x128xf32, #tpu.memory_space<vmem>>) attributes {dimension_semantics = [], scalar_prefetch = 0 : i64, scratch_operands = 0 : i64, tpu.core_type = #tpu.core_type<tc>} {
    %c0 = arith.constant 0 : index
    %c0_0 = arith.constant 0 : index
    %0 = vector.load %arg7[%c0, %c0_0] : memref<40x1xf32, #tpu.memory_space<vmem>>, vector<40x1xf32>
    %1 = tpu.iota {dimensions = array<i32: 1>} : vector<1x128xi32>
    %c8_i32 = arith.constant 8 : i32
    %2 = vector.broadcast %c8_i32 : i32 to vector<1x128xi32>
    %3 = arith.cmpi slt, %1, %2 : vector<1x128xi32>
    %c0_1 = arith.constant 0 : index
    %c0_2 = arith.constant 0 : index
    %4 = vector.load %arg0[%c0_1, %c0_2] : memref<40x64xbf16, #tpu.memory_space<vmem>>, vector<40x64xbf16>
    %c1 = arith.constant 1 : index
    %c0_3 = arith.constant 0 : index
    %c0_4 = arith.constant 0 : index
    %5 = vector.load %arg1[%c1, %c0_3, %c0_4] : memref<3x64x128xbf16, #tpu.memory_space<vmem>>, vector<1x64x128xbf16>
    %6 = vector.shape_cast %5 : vector<1x64x128xbf16> to vector<64x128xbf16>
    %cst = arith.constant dense<0.000000e+00> : vector<40x128xf32>
    %7 = tpu.matmul %4, %6, %cst {dimension_numbers = #tpu.dot_dimension_numbers<[1], [0], [0], [1], [0, 0, 1, 1], [], []>} : vector<40x64xbf16>, vector<64x128xbf16>, vector<40x128xf32> -> vector<40x128xf32>
    %c0_5 = arith.constant 0 : index
    %c0_6 = arith.constant 0 : index
    %c0_7 = arith.constant 0 : index
    %8 = vector.load %arg1[%c0_5, %c0_6, %c0_7] : memref<3x64x128xbf16, #tpu.memory_space<vmem>>, vector<1x64x128xbf16>
    %9 = vector.shape_cast %8 : vector<1x64x128xbf16> to vector<64x128xbf16>
    %cst_8 = arith.constant dense<0.000000e+00> : vector<40x128xf32>
    %10 = tpu.matmul %4, %9, %cst_8 {dimension_numbers = #tpu.dot_dimension_numbers<[1], [0], [0], [1], [0, 0, 1, 1], [], []>} : vector<40x64xbf16>, vector<64x128xbf16>, vector<40x128xf32> -> vector<40x128xf32>
    %c1_i32 = arith.constant 1 : i32
    %11 = tpu.dynamic_rotate %10 by %c1_i32 dim 0 : vector<40x128xf32>, i32 -> vector<40x128xf32>
    %12 = arith.addf %7, %11 : vector<40x128xf32>
    %c2 = arith.constant 2 : index
    %c0_9 = arith.constant 0 : index
    %c0_10 = arith.constant 0 : index
    %13 = vector.load %arg1[%c2, %c0_9, %c0_10] : memref<3x64x128xbf16, #tpu.memory_space<vmem>>, vector<1x64x128xbf16>
    %14 = vector.shape_cast %13 : vector<1x64x128xbf16> to vector<64x128xbf16>
    %cst_11 = arith.constant dense<0.000000e+00> : vector<40x128xf32>
    %15 = tpu.matmul %4, %14, %cst_11 {dimension_numbers = #tpu.dot_dimension_numbers<[1], [0], [0], [1], [0, 0, 1, 1], [], []>} : vector<40x64xbf16>, vector<64x128xbf16>, vector<40x128xf32> -> vector<40x128xf32>
    %c39_i32 = arith.constant 39 : i32
    %16 = tpu.dynamic_rotate %15 by %c39_i32 dim 0 : vector<40x128xf32>, i32 -> vector<40x128xf32>
    %17 = arith.addf %12, %16 : vector<40x128xf32>
    %18 = vector.broadcast %0 : vector<40x1xf32> to vector<40x128xf32>
    %19 = arith.mulf %17, %18 : vector<40x128xf32>
    %c0_12 = arith.constant 0 : index
    %c0_13 = arith.constant 0 : index
    %20 = vector.load %arg3[%c0_12, %c0_13] : memref<1x128xf32, #tpu.memory_space<vmem>>, vector<1x128xf32>
    %c0_14 = arith.constant 0 : index
    %c0_15 = arith.constant 0 : index
    %21 = vector.load %arg4[%c0_14, %c0_15] : memref<1x128xf32, #tpu.memory_space<vmem>>, vector<1x128xf32>
    %cst_16 = arith.constant dense<0.000000e+00> : vector<128xf32>
    %22 = vector.multi_reduction <add>, %19, %cst_16 [0] : vector<40x128xf32> to vector<128xf32>
    %23 = vector.shape_cast %22 : vector<128xf32> to vector<1x128xf32>
    %24 = arith.mulf %19, %19 : vector<40x128xf32>
    %cst_17 = arith.constant dense<0.000000e+00> : vector<128xf32>
    %25 = vector.multi_reduction <add>, %24, %cst_17 [0] : vector<40x128xf32> to vector<128xf32>
    %26 = vector.shape_cast %25 : vector<128xf32> to vector<1x128xf32>
    %c120_i32 = arith.constant 120 : i32
    %27 = tpu.dynamic_rotate %23 by %c120_i32 dim 1 : vector<1x128xf32>, i32 -> vector<1x128xf32>
    %28 = arith.addf %23, %27 : vector<1x128xf32>
    %c112_i32 = arith.constant 112 : i32
    %29 = tpu.dynamic_rotate %28 by %c112_i32 dim 1 : vector<1x128xf32>, i32 -> vector<1x128xf32>
    %30 = arith.addf %28, %29 : vector<1x128xf32>
    %c96_i32 = arith.constant 96 : i32
    %31 = tpu.dynamic_rotate %30 by %c96_i32 dim 1 : vector<1x128xf32>, i32 -> vector<1x128xf32>
    %32 = arith.addf %30, %31 : vector<1x128xf32>
    %c64_i32 = arith.constant 64 : i32
    %33 = tpu.dynamic_rotate %32 by %c64_i32 dim 1 : vector<1x128xf32>, i32 -> vector<1x128xf32>
    %34 = arith.addf %32, %33 : vector<1x128xf32>
    %c120_i32_18 = arith.constant 120 : i32
    %35 = tpu.dynamic_rotate %26 by %c120_i32_18 dim 1 : vector<1x128xf32>, i32 -> vector<1x128xf32>
    %36 = arith.addf %26, %35 : vector<1x128xf32>
    %c112_i32_19 = arith.constant 112 : i32
    %37 = tpu.dynamic_rotate %36 by %c112_i32_19 dim 1 : vector<1x128xf32>, i32 -> vector<1x128xf32>
    %38 = arith.addf %36, %37 : vector<1x128xf32>
    %c96_i32_20 = arith.constant 96 : i32
    %39 = tpu.dynamic_rotate %38 by %c96_i32_20 dim 1 : vector<1x128xf32>, i32 -> vector<1x128xf32>
    %40 = arith.addf %38, %39 : vector<1x128xf32>
    %c64_i32_21 = arith.constant 64 : i32
    %41 = tpu.dynamic_rotate %40 by %c64_i32_21 dim 1 : vector<1x128xf32>, i32 -> vector<1x128xf32>
    %42 = arith.addf %40, %41 : vector<1x128xf32>
    %cst_22 = arith.constant 0.001953125 : f32
    %43 = vector.broadcast %cst_22 : f32 to vector<1x128xf32>
    %44 = arith.mulf %34, %43 : vector<1x128xf32>
    %cst_23 = arith.constant 0.001953125 : f32
    %45 = vector.broadcast %cst_23 : f32 to vector<1x128xf32>
    %46 = arith.mulf %42, %45 : vector<1x128xf32>
    %47 = arith.mulf %44, %44 : vector<1x128xf32>
    %48 = arith.subf %46, %47 : vector<1x128xf32>
    %cst_24 = arith.constant 9.99999974E-6 : f32
    %49 = vector.broadcast %cst_24 : f32 to vector<1x128xf32>
    %50 = arith.addf %48, %49 : vector<1x128xf32>
    %51 = math.rsqrt %50 : vector<1x128xf32>
    %cst_25 = arith.constant 0.000000e+00 : f32
    %52 = vector.broadcast %cst_25 : f32 to vector<1x128xf32>
    %53 = arith.select %3, %44, %52 : vector<1x128xi1>, vector<1x128xf32>
    %c8_i32_26 = arith.constant 8 : i32
    %54 = tpu.dynamic_rotate %53 by %c8_i32_26 dim 1 : vector<1x128xf32>, i32 -> vector<1x128xf32>
    %55 = arith.addf %53, %54 : vector<1x128xf32>
    %c16_i32 = arith.constant 16 : i32
    %56 = tpu.dynamic_rotate %55 by %c16_i32 dim 1 : vector<1x128xf32>, i32 -> vector<1x128xf32>
    %57 = arith.addf %55, %56 : vector<1x128xf32>
    %c32_i32 = arith.constant 32 : i32
    %58 = tpu.dynamic_rotate %57 by %c32_i32 dim 1 : vector<1x128xf32>, i32 -> vector<1x128xf32>
    %59 = arith.addf %57, %58 : vector<1x128xf32>
    %c64_i32_27 = arith.constant 64 : i32
    %60 = tpu.dynamic_rotate %59 by %c64_i32_27 dim 1 : vector<1x128xf32>, i32 -> vector<1x128xf32>
    %61 = arith.addf %59, %60 : vector<1x128xf32>
    %cst_28 = arith.constant 0.000000e+00 : f32
    %62 = vector.broadcast %cst_28 : f32 to vector<1x128xf32>
    %63 = arith.select %3, %51, %62 : vector<1x128xi1>, vector<1x128xf32>
    %c8_i32_29 = arith.constant 8 : i32
    %64 = tpu.dynamic_rotate %63 by %c8_i32_29 dim 1 : vector<1x128xf32>, i32 -> vector<1x128xf32>
    %65 = arith.addf %63, %64 : vector<1x128xf32>
    %c16_i32_30 = arith.constant 16 : i32
    %66 = tpu.dynamic_rotate %65 by %c16_i32_30 dim 1 : vector<1x128xf32>, i32 -> vector<1x128xf32>
    %67 = arith.addf %65, %66 : vector<1x128xf32>
    %c32_i32_31 = arith.constant 32 : i32
    %68 = tpu.dynamic_rotate %67 by %c32_i32_31 dim 1 : vector<1x128xf32>, i32 -> vector<1x128xf32>
    %69 = arith.addf %67, %68 : vector<1x128xf32>
    %c64_i32_32 = arith.constant 64 : i32
    %70 = tpu.dynamic_rotate %69 by %c64_i32_32 dim 1 : vector<1x128xf32>, i32 -> vector<1x128xf32>
    %71 = arith.addf %69, %70 : vector<1x128xf32>
    %72 = arith.mulf %20, %71 : vector<1x128xf32>
    %73 = arith.mulf %61, %72 : vector<1x128xf32>
    %74 = arith.subf %21, %73 : vector<1x128xf32>
    %75 = vector.broadcast %72 : vector<1x128xf32> to vector<40x128xf32>
    %76 = arith.mulf %19, %75 : vector<40x128xf32>
    %77 = vector.broadcast %74 : vector<1x128xf32> to vector<40x128xf32>
    %78 = arith.addf %76, %77 : vector<40x128xf32>
    %cst_33 = arith.constant 0.000000e+00 : f32
    %79 = vector.broadcast %cst_33 : f32 to vector<40x128xf32>
    %80 = arith.maximumf %78, %79 : vector<40x128xf32>
    %81 = vector.broadcast %0 : vector<40x1xf32> to vector<40x128xf32>
    %82 = arith.mulf %80, %81 : vector<40x128xf32>
    %83 = arith.truncf %82 : vector<40x128xf32> to vector<40x128xbf16>
    %c1_34 = arith.constant 1 : index
    %c0_35 = arith.constant 0 : index
    %c0_36 = arith.constant 0 : index
    %84 = vector.load %arg2[%c1_34, %c0_35, %c0_36] : memref<3x128x128xbf16, #tpu.memory_space<vmem>>, vector<1x128x128xbf16>
    %85 = vector.shape_cast %84 : vector<1x128x128xbf16> to vector<128x128xbf16>
    %cst_37 = arith.constant dense<0.000000e+00> : vector<40x128xf32>
    %86 = tpu.matmul %83, %85, %cst_37 {dimension_numbers = #tpu.dot_dimension_numbers<[1], [0], [0], [1], [0, 0, 1, 1], [], []>} : vector<40x128xbf16>, vector<128x128xbf16>, vector<40x128xf32> -> vector<40x128xf32>
    %c0_38 = arith.constant 0 : index
    %c0_39 = arith.constant 0 : index
    %c0_40 = arith.constant 0 : index
    %87 = vector.load %arg2[%c0_38, %c0_39, %c0_40] : memref<3x128x128xbf16, #tpu.memory_space<vmem>>, vector<1x128x128xbf16>
    %88 = vector.shape_cast %87 : vector<1x128x128xbf16> to vector<128x128xbf16>
    %cst_41 = arith.constant dense<0.000000e+00> : vector<40x128xf32>
    %89 = tpu.matmul %83, %88, %cst_41 {dimension_numbers = #tpu.dot_dimension_numbers<[1], [0], [0], [1], [0, 0, 1, 1], [], []>} : vector<40x128xbf16>, vector<128x128xbf16>, vector<40x128xf32> -> vector<40x128xf32>
    %c1_i32_42 = arith.constant 1 : i32
    %90 = tpu.dynamic_rotate %89 by %c1_i32_42 dim 0 : vector<40x128xf32>, i32 -> vector<40x128xf32>
    %91 = arith.addf %86, %90 : vector<40x128xf32>
    %c2_43 = arith.constant 2 : index
    %c0_44 = arith.constant 0 : index
    %c0_45 = arith.constant 0 : index
    %92 = vector.load %arg2[%c2_43, %c0_44, %c0_45] : memref<3x128x128xbf16, #tpu.memory_space<vmem>>, vector<1x128x128xbf16>
    %93 = vector.shape_cast %92 : vector<1x128x128xbf16> to vector<128x128xbf16>
    %cst_46 = arith.constant dense<0.000000e+00> : vector<40x128xf32>
    %94 = tpu.matmul %83, %93, %cst_46 {dimension_numbers = #tpu.dot_dimension_numbers<[1], [0], [0], [1], [0, 0, 1, 1], [], []>} : vector<40x128xbf16>, vector<128x128xbf16>, vector<40x128xf32> -> vector<40x128xf32>
    %c39_i32_47 = arith.constant 39 : i32
    %95 = tpu.dynamic_rotate %94 by %c39_i32_47 dim 0 : vector<40x128xf32>, i32 -> vector<40x128xf32>
    %96 = arith.addf %91, %95 : vector<40x128xf32>
    %97 = vector.broadcast %0 : vector<40x1xf32> to vector<40x128xf32>
    %98 = arith.mulf %96, %97 : vector<40x128xf32>
    %c0_48 = arith.constant 0 : index
    %c0_49 = arith.constant 0 : index
    %99 = vector.load %arg5[%c0_48, %c0_49] : memref<1x128xf32, #tpu.memory_space<vmem>>, vector<1x128xf32>
    %c0_50 = arith.constant 0 : index
    %c0_51 = arith.constant 0 : index
    %100 = vector.load %arg6[%c0_50, %c0_51] : memref<1x128xf32, #tpu.memory_space<vmem>>, vector<1x128xf32>
    %cst_52 = arith.constant dense<0.000000e+00> : vector<128xf32>
    %101 = vector.multi_reduction <add>, %98, %cst_52 [0] : vector<40x128xf32> to vector<128xf32>
    %102 = vector.shape_cast %101 : vector<128xf32> to vector<1x128xf32>
    %103 = arith.mulf %98, %98 : vector<40x128xf32>
    %cst_53 = arith.constant dense<0.000000e+00> : vector<128xf32>
    %104 = vector.multi_reduction <add>, %103, %cst_53 [0] : vector<40x128xf32> to vector<128xf32>
    %105 = vector.shape_cast %104 : vector<128xf32> to vector<1x128xf32>
    %c120_i32_54 = arith.constant 120 : i32
    %106 = tpu.dynamic_rotate %102 by %c120_i32_54 dim 1 : vector<1x128xf32>, i32 -> vector<1x128xf32>
    %107 = arith.addf %102, %106 : vector<1x128xf32>
    %c112_i32_55 = arith.constant 112 : i32
    %108 = tpu.dynamic_rotate %107 by %c112_i32_55 dim 1 : vector<1x128xf32>, i32 -> vector<1x128xf32>
    %109 = arith.addf %107, %108 : vector<1x128xf32>
    %c96_i32_56 = arith.constant 96 : i32
    %110 = tpu.dynamic_rotate %109 by %c96_i32_56 dim 1 : vector<1x128xf32>, i32 -> vector<1x128xf32>
    %111 = arith.addf %109, %110 : vector<1x128xf32>
    %c64_i32_57 = arith.constant 64 : i32
    %112 = tpu.dynamic_rotate %111 by %c64_i32_57 dim 1 : vector<1x128xf32>, i32 -> vector<1x128xf32>
    %113 = arith.addf %111, %112 : vector<1x128xf32>
    %c120_i32_58 = arith.constant 120 : i32
    %114 = tpu.dynamic_rotate %105 by %c120_i32_58 dim 1 : vector<1x128xf32>, i32 -> vector<1x128xf32>
    %115 = arith.addf %105, %114 : vector<1x128xf32>
    %c112_i32_59 = arith.constant 112 : i32
    %116 = tpu.dynamic_rotate %115 by %c112_i32_59 dim 1 : vector<1x128xf32>, i32 -> vector<1x128xf32>
    %117 = arith.addf %115, %116 : vector<1x128xf32>
    %c96_i32_60 = arith.constant 96 : i32
    %118 = tpu.dynamic_rotate %117 by %c96_i32_60 dim 1 : vector<1x128xf32>, i32 -> vector<1x128xf32>
    %119 = arith.addf %117, %118 : vector<1x128xf32>
    %c64_i32_61 = arith.constant 64 : i32
    %120 = tpu.dynamic_rotate %119 by %c64_i32_61 dim 1 : vector<1x128xf32>, i32 -> vector<1x128xf32>
    %121 = arith.addf %119, %120 : vector<1x128xf32>
    %cst_62 = arith.constant 0.001953125 : f32
    %122 = vector.broadcast %cst_62 : f32 to vector<1x128xf32>
    %123 = arith.mulf %113, %122 : vector<1x128xf32>
    %cst_63 = arith.constant 0.001953125 : f32
    %124 = vector.broadcast %cst_63 : f32 to vector<1x128xf32>
    %125 = arith.mulf %121, %124 : vector<1x128xf32>
    %126 = arith.mulf %123, %123 : vector<1x128xf32>
    %127 = arith.subf %125, %126 : vector<1x128xf32>
    %cst_64 = arith.constant 9.99999974E-6 : f32
    %128 = vector.broadcast %cst_64 : f32 to vector<1x128xf32>
    %129 = arith.addf %127, %128 : vector<1x128xf32>
    %130 = math.rsqrt %129 : vector<1x128xf32>
    %cst_65 = arith.constant 0.000000e+00 : f32
    %131 = vector.broadcast %cst_65 : f32 to vector<1x128xf32>
    %132 = arith.select %3, %123, %131 : vector<1x128xi1>, vector<1x128xf32>
    %c8_i32_66 = arith.constant 8 : i32
    %133 = tpu.dynamic_rotate %132 by %c8_i32_66 dim 1 : vector<1x128xf32>, i32 -> vector<1x128xf32>
    %134 = arith.addf %132, %133 : vector<1x128xf32>
    %c16_i32_67 = arith.constant 16 : i32
    %135 = tpu.dynamic_rotate %134 by %c16_i32_67 dim 1 : vector<1x128xf32>, i32 -> vector<1x128xf32>
    %136 = arith.addf %134, %135 : vector<1x128xf32>
    %c32_i32_68 = arith.constant 32 : i32
    %137 = tpu.dynamic_rotate %136 by %c32_i32_68 dim 1 : vector<1x128xf32>, i32 -> vector<1x128xf32>
    %138 = arith.addf %136, %137 : vector<1x128xf32>
    %c64_i32_69 = arith.constant 64 : i32
    %139 = tpu.dynamic_rotate %138 by %c64_i32_69 dim 1 : vector<1x128xf32>, i32 -> vector<1x128xf32>
    %140 = arith.addf %138, %139 : vector<1x128xf32>
    %cst_70 = arith.constant 0.000000e+00 : f32
    %141 = vector.broadcast %cst_70 : f32 to vector<1x128xf32>
    %142 = arith.select %3, %130, %141 : vector<1x128xi1>, vector<1x128xf32>
    %c8_i32_71 = arith.constant 8 : i32
    %143 = tpu.dynamic_rotate %142 by %c8_i32_71 dim 1 : vector<1x128xf32>, i32 -> vector<1x128xf32>
    %144 = arith.addf %142, %143 : vector<1x128xf32>
    %c16_i32_72 = arith.constant 16 : i32
    %145 = tpu.dynamic_rotate %144 by %c16_i32_72 dim 1 : vector<1x128xf32>, i32 -> vector<1x128xf32>
    %146 = arith.addf %144, %145 : vector<1x128xf32>
    %c32_i32_73 = arith.constant 32 : i32
    %147 = tpu.dynamic_rotate %146 by %c32_i32_73 dim 1 : vector<1x128xf32>, i32 -> vector<1x128xf32>
    %148 = arith.addf %146, %147 : vector<1x128xf32>
    %c64_i32_74 = arith.constant 64 : i32
    %149 = tpu.dynamic_rotate %148 by %c64_i32_74 dim 1 : vector<1x128xf32>, i32 -> vector<1x128xf32>
    %150 = arith.addf %148, %149 : vector<1x128xf32>
    %151 = arith.mulf %99, %150 : vector<1x128xf32>
    %152 = arith.mulf %140, %151 : vector<1x128xf32>
    %153 = arith.subf %100, %152 : vector<1x128xf32>
    %154 = vector.broadcast %151 : vector<1x128xf32> to vector<40x128xf32>
    %155 = arith.mulf %98, %154 : vector<40x128xf32>
    %156 = vector.broadcast %153 : vector<1x128xf32> to vector<40x128xf32>
    %157 = arith.addf %155, %156 : vector<40x128xf32>
    %cst_75 = arith.constant 0.000000e+00 : f32
    %158 = vector.broadcast %cst_75 : f32 to vector<40x128xf32>
    %159 = arith.maximumf %157, %158 : vector<40x128xf32>
    %c0_76 = arith.constant 0 : index
    %c0_77 = arith.constant 0 : index
    %160 = vector.load %arg8[%c0_76, %c0_77] : memref<40x128xf32, #tpu.memory_space<vmem>>, vector<40x128xf32>
    tpu.vector_store %arg8[%c0_76, %c0_77], %159 {strides = array<i32>} : memref<40x128xf32, #tpu.memory_space<vmem>>, vector<40x128xf32>,
    return
  }
}

</mosaic_0001>

<bundles_post_ra>
// kernel: conv_block_2d.1
= control target key start
LH: loop header
LB: loop body
LE: loop exit
PB: predicated region body
PF: predicated region fallthrough
CT: control target
= control target key end

     0   :  { %v1375_v0 = vmov 0.0   ;;  %vm1376_vm0 = vmmov 0   ;;  %v1377_v4 = vmov 0   ;;  %vm97_vm1 = vcmask 523264   ;;  %s1380_s22 = smov 96   ;;  %s1381_s23 = smov 64   ;;  %s1851_s1 = inlined_call_operand.vmem [shape: bf16[3,64,128], index: 1, kind: input, shape index: {}]   ;;  %s1852_s0 = inlined_call_operand.vmem [shape: bf16[40,64], index: 0, kind: input, shape index: {}]   ;;  %s1853_s7 = inlined_call_operand.vmem [shape: f32[40,1], index: 7, kind: input, shape index: {}]   ;;  %s1854_s2 = inlined_call_operand.vmem [shape: bf16[3,128,128], index: 2, kind: input, shape index: {}]   ;;  %s1855_s3 = inlined_call_operand.vmem [shape: f32[1,128], index: 3, kind: input, shape index: {}]   ;;  %s1856_s4 = inlined_call_operand.vmem [shape: f32[1,128], index: 4, kind: input, shape index: {}]   ;;  %s1857_s5 = inlined_call_operand.vmem [shape: f32[1,128], index: 5, kind: input, shape index: {}]   ;;  %s1858_s6 = inlined_call_operand.vmem [shape: f32[1,128], index: 6, kind: input, shape index: {}]   ;;  %s1859_s8 = inlined_call_operand.vmem [shape: f32[40,128], index: 8, kind: output, shape index: {}]  }
   0x1   :  { %1176 = vmatprep.subr.bf16.mxu0 %v1375_v0  ;;  %v1332_v1 = vld [vmem:[%s1851_s1 + $0x18] sm:$0xff]   ;;  %1196 = vmatprep.subr.bf16.mxu1 %v1375_v0  ;;  %v1334_v3 = vld [vmem:[%s1851_s1 + $0x10] sm:$0xff]   ;;  %v1336_v6 = vld [vmem:[%s1851_s1 + $0x8] sm:$0xff]   ;;  %v35_v42 = vlaneseq  ;;  %s1382_s24 = smov 8   ;;  %s1383_s25 = smov 16  }
   0x2   :  { %v1333_v2 = vld [vmem:[%s1851_s1 + $0x38] sm:$0xff]   ;;  %1184 = vmatprep.mubr.msk.bf16.mxu0 %vm1376_vm0, %v1375_v0  ;;  %1204 = vmatprep.mubr.msk.bf16.mxu1 %vm1376_vm0, %v1375_v0  ;;  %v1335_v5 = vld [vmem:[%s1851_s1 + $0x30] sm:$0xff]   ;;  %v1337_v7 = vld [vmem:[%s1851_s1 + $0x28] sm:$0xff]   ;;  %s1384_s26 = smov 32  }
   0x3   :  { %1177 = vmatpush3.bf16.msra.mxu0 %v1332_v1  ;;  %1330 = vset.pattern.permute.xlu0 %v1377_v4  ;;  %v1338_v8 = vld [vmem:[%s1851_s1] sm:$0xff]   ;;  %v1341_v11 = vld [vmem:[%s1851_s1 + $0x58] sm:$0xff]   ;;  %v32_v13 = vld [vmem:[%s1853_s7 + $0x10] sm:$0xff]  ;;  %v1536_v47 = vshrl.u32 %v35_v42, 7 }
   0x4   :  { %1178 = vmatprep.subr.bf16.mxu0 %v1375_v0  ;;  %1197 = vmatpush3.bf16.msra.mxu1 %v1333_v2  ;;  %v1340_v9 = vld [vmem:[%s1851_s1 + $0x20] sm:$0xff]   ;;  %v31_v14 = vld [vmem:[%s1853_s7 + $0x8] sm:$0xff]  ;;  %v1342_v15 = vld [vmem:[%s1851_s1 + $0x50] sm:$0xff]  }
   0x5   :  { %1198 = vmatprep.subr.bf16.mxu1 %v1375_v0  ;;  %1331 = vset.pattern.permute.xlu1 %v1377_v4  ;;  %v1339_v10 = vld [vmem:[%s1852_s0] sm:$0xff]   ;;  %v33_v16 = vld [vmem:[%s1853_s7 + $0x18] sm:$0xff]  ;;  %v1343_v17 = vld [vmem:[%s1852_s0 + $0x8] sm:$0xff]   ;;  %vm170_vm2 = vcmp.lt.s32.totalorder %v1536_v47, 1  ;;  %vm350_vm3 = vcmp.lt.s32.totalorder %v1536_v47, 7 }
   0x6   :  { %v30_v12 = vld [vmem:[%s1853_s7] sm:$0xff]  ;;  %373 = vperm.xlu1 %1331, %v32_v13   ;;  %v1344_v19 = vld [vmem:[%s1851_s1 + $0x48] sm:$0xff]   ;;  %v1345_v21 = vld [vmem:[%s1852_s0 + $0x10] ss:$0 sps:$4 sm:$0xff]   ;;  %s1378_s0 = smov 120  }
   0x7   :  { %1179 = vmatpush3.bf16.msra.mxu0 %v1334_v3  ;;  %363 = vperm.xlu0 %1330, %v30_v12   ;;  %v34_v18 = vld [vmem:[%s1853_s7 + $0x20] sm:$0xff] }
   0x8   :  { %1180 = vmatprep.subr.bf16.mxu0 %v1375_v0  ;;  %1199 = vmatpush3.bf16.msra.mxu1 %v1335_v5  ;;  %v1346_v20 = vld [vmem:[%s1851_s1 + $0x40] sm:$0xff]   ;;  %s1379_s1 = smov 112  }
   0x9   :  { %1200 = vmatprep.subr.bf16.mxu1 %v1375_v0 }
   0xa   :  { %378 = vperm.xlu1 %1331, %v33_v16  }
   0xb   :  { %1181 = vmatpush3.bf16.msra.mxu0 %v1336_v6  ;;  %368 = vperm.xlu0 %1330, %v31_v14  }
   0xc   :  { %1182 = vmatprep.subr.bf16.mxu0 %v1375_v0  ;;  %1201 = vmatpush3.bf16.msra.mxu1 %v1337_v7 }
   0xd   :  { %1202 = vmatprep.subr.bf16.mxu1 %v1375_v0 }
   0xf   :  { %1183 = vmatpush3.bf16.msra.mxu0 %v1338_v8  ;;  %383 = vperm.xlu0 %1330, %v34_v18  }
  0x10   :  { %1203 = vmatpush3.bf16.msra.mxu1 %v1340_v9  ;;  %1216 = vmatprep.subr.bf16.mxu0 %v1375_v0 }
  0x11   :  { %1236 = vmatprep.subr.bf16.mxu1 %v1375_v0 }
  0x12   :  { %1185 = vmatmul.mubr.msk.bf16.vlgmr.msra.gmra.mxu0 %vm97_vm1, %v1339_v10 }
  0x13   :  { %1217 = vmatpush3.bf16.msra.mxu0 %v1341_v11  ;;  %1205 = vmatmul.mubr.msk.bf16.vlgmr.msra.gmra.mxu1 %vm97_vm1, %v1339_v10 }
  0x14   :  { %1218 = vmatprep.subr.bf16.mxu0 %v1375_v0  ;;  %1188 = vmatprep.mubr.msk.bf16.mxu0 %vm1376_vm0, %v1375_v0 }
  0x15   :  { %1208 = vmatprep.mubr.msk.bf16.mxu1 %vm1376_vm0, %v1375_v0 }
  0x17   :  { %1219 = vmatpush3.bf16.msra.mxu0 %v1342_v15 }
  0x18   :  { %1220 = vmatprep.subr.bf16.mxu0 %v1375_v0 }
  0x1a   :  { %1189 = vmatmul.mubr.msk.bf16.gmra.mxu0 %vm97_vm1, %v1343_v17 }
  0x1b   :  { %1209 = vmatmul.mubr.msk.bf16.gmra.mxu1 %vm97_vm1, %v1343_v17  ;;  %1221 = vmatpush3.bf16.msra.mxu0 %v1344_v19 }
  0x1c   :  { %1192 = vmatprep.mubr.msk.bf16.mxu0 %vm1376_vm0, %v1375_v0  ;;  %1212 = vmatprep.mubr.msk.bf16.mxu1 %vm1376_vm0, %v1375_v0 }
  0x1d   :  { %1222 = vmatprep.subr.bf16.mxu0 %v1375_v0 }
  0x1f   :  { %1223 = vmatpush3.bf16.msra.mxu0 %v1346_v20 }
  0x20   :  { %1264 = vmatprep.subr.bf16.mxu0 %v1375_v0 }
  0x22   :  { %1193 = vmatmul.mubr.msk.bf16.gmra.mxu0 %vm97_vm1, %v1345_v21 }
  0x23   :  { %1213 = vmatmul.mubr.msk.bf16.gmra.mxu1 %vm97_vm1, %v1345_v21  ;;  %1224 = vmatprep.mubr.msk.bf16.mxu0 %vm1376_vm0, %v1375_v0 }
  0x24   :  { %1252 = vmatprep.mubr.msk.bf16.mxu1 %vm1376_vm0, %v1375_v0 }
  0x2a   :  { %1225 = vmatmul.mubr.msk.bf16.vlgmr.msra.gmra.mxu0 %vm97_vm1, %v1339_v10 }
  0x2b   :  { %1228 = vmatprep.mubr.msk.bf16.mxu0 %vm1376_vm0, %v1375_v0 }
  0x32   :  { %1229 = vmatmul.mubr.msk.bf16.gmra.mxu0 %vm97_vm1, %v1343_v17 }
  0x33   :  { %1232 = vmatprep.mubr.msk.bf16.mxu0 %vm1376_vm0, %v1375_v0 }
  0x3a   :  { %1233 = vmatmul.mubr.msk.bf16.gmra.mxu0 %vm97_vm1, %v1345_v21 }
  0x3b   :  { %1280 = vmatprep.mubr.msk.bf16.mxu0 %vm1376_vm0, %v1375_v0 }
  0x81   :  { %v1566_v19 = vpop.permute.xlu1 %373 }
  0x82   :  { %v1544_v60 = vpop.permute.xlu0 %363 }
  0x86   :  { %v1552_v10 = vpop.permute.xlu0 %368 }
  0xd2   :  { %v141_v22 = vpop.f32.mrf.mxu0 }
  0xd3   :  { %v234_v23 = vpop.f32.mrf.mxu1  ;;  %v163_v52 = vrot.slane %v141_v22, 7 }
  0xd4   :  { %v1186_v24 = vpop.f32.mrf.mxu0 }
  0xd5   :  { %v1206_v25 = vpop.f32.mrf.mxu1 }
  0xd6   :  { %v144_v26 = vpop.f32.mrf.mxu0 }
  0xd7   :  { %v237_v27 = vpop.f32.mrf.mxu1  ;;  %v164_v51 = vrot.slane %v144_v26, 7 }
  0xd8   :  { %v1187_v28 = vpop.f32.mrf.mxu0 }
  0xd9   :  { %v1207_v29 = vpop.f32.mrf.mxu1  ;;  %v174_v58 = vsel %vm170_vm2, %v163_v52, %v164_v51 }
  0xda   :  { %v149_v30 = vpop.f32.mrf.mxu0  ;;  %v238_v2 = vadd.f32 %v237_v27, %v174_v58 }
  0xdb   :  { %v242_v31 = vpop.f32.mrf.mxu1  ;;  %v165_v59 = vrot.slane %v149_v30, 7 }
  0xdc   :  { %v1190_v32 = vpop.f32.mrf.mxu0 }
  0xdd   :  { %v1210_v33 = vpop.f32.mrf.mxu1  ;;  %v173_v4 = vsel %vm170_vm2, %v164_v51, %v165_v59 }
  0xde   :  { %v152_v34 = vpop.f32.mrf.mxu0  ;;  %v243_v12 = vadd.f32 %v242_v31, %v173_v4 }
  0xdf   :  { %v245_v35 = vpop.f32.mrf.mxu1  ;;  %v166_v5 = vrot.slane %v152_v34, 7 }
  0xe0   :  { %v1191_v36 = vpop.f32.mrf.mxu0 }
  0xe1   :  { %v1211_v37 = vpop.f32.mrf.mxu1  ;;  %v172_v15 = vsel %vm170_vm2, %v165_v59, %v166_v5  ;;  %v1583_v36 = vpop.permute.xlu0 %383 }
  0xe2   :  { %v157_v38 = vpop.f32.mrf.mxu0  ;;  %v1585_v37 = vpop.permute.xlu1 %378 }
  0xe3   :  { %v250_v39 = vpop.f32.mrf.mxu1  ;;  %v167_v49 = vrot.slane %v157_v38, 7 }
  0xe4   :  { %v1194_v40 = vpop.f32.mrf.mxu0 }
  0xe5   :  { %v1214_v41 = vpop.f32.mrf.mxu1  ;;  %v175_v55 = vsel %vm170_vm2, %v167_v49, %v163_v52  ;;  %v171_v16 = vsel %vm170_vm2, %v166_v5, %v167_v49 }
  0xe6   :  { %v160_v43 = vpop.f32.mrf.mxu0  ;;  %v235_v63 = vadd.f32 %v234_v23, %v175_v55  ;;  %v246_v23 = vadd.f32 %v245_v35, %v172_v15  ;;  %v251_v24 = vadd.f32 %v250_v39, %v171_v16  ;;  %v1609_v16 = vand.u32 127, %v35_v42 }
  0xe7   :  { %v253_v44 = vpop.f32.mrf.mxu1 }
  0xe8   :  { %v1195_v45 = vpop.f32.mrf.mxu0  ;;  %vm37_vm4 = vcmp.lt.s32.totalorder %v1609_v16, 8 }
  0xe9   :  { %v1215_v46 = vpop.f32.mrf.mxu1 }
  0xea   :  { %v323_v48 = vpop.f32.mrf.mxu0 }
  0xeb   :  { %v345_v56 = vrot.slane %v323_v48, 1 }
  0xec   :  { %v1226_v50 = vpop.f32.mrf.mxu0 }
  0xee   :  { %v326_v53 = vpop.f32.mrf.mxu0 }
  0xef   :  { %v346_v54 = vrot.slane %v326_v53, 1 }
  0xf0   :  { %v1227_v57 = vpop.f32.mrf.mxu0 }
  0xf1   :  { %v354_v61 = vsel %vm350_vm3, %v345_v56, %v346_v54 }
  0xf2   :  { %v331_v62 = vpop.f32.mrf.mxu0  ;;  %v356_v6 = vadd.f32 %v354_v61, %v235_v63 }
  0xf3   :  { %v347_v1 = vrot.slane %v331_v62, 1 }
  0xf4   :  { %v1230_v3 = vpop.f32.mrf.mxu0  ;;  %v1562_v17 = vmul.f32 %v1544_v60, %v356_v6 }
  0xf5   :  { %v353_v7 = vsel %vm350_vm3, %v346_v54, %v347_v1 }
  0xf6   :  { %v357_v8 = vadd.f32 %v353_v7, %v238_v2  ;;  %v334_v9 = vpop.f32.mrf.mxu0  ;;  %v403_v28 = vmul.f32 %v1562_v17, %v1562_v17 }
  0xf7   :  { %v348_v11 = vrot.slane %v334_v9, 1 }
  0xf8   :  { %v1555_v13 = vmul.f32 %v1552_v10, %v357_v8  ;;  %v1231_v14 = vpop.f32.mrf.mxu0 }
  0xf9   :  { %v352_v18 = vsel %vm350_vm3, %v347_v1, %v348_v11 }
  0xfa   :  { %v358_v20 = vadd.f32 %v352_v18, %v243_v12  ;;  %v339_v21 = vpop.f32.mrf.mxu0  ;;  %v404_v25 = vmul.f32 %v1555_v13, %v1555_v13  ;;  %v393_v31 = vadd.f32 %v1555_v13, %v1562_v17 }
  0xfb   :  { %v349_v22 = vrot.slane %v339_v21, 1 }
  0xfc   :  { %v1571_v26 = vmul.f32 %v1566_v19, %v358_v20  ;;  %v1234_v27 = vpop.f32.mrf.mxu0  ;;  %v408_v38 = vadd.f32 %v404_v25, %v403_v28 }
  0xfd   :  { %v351_v29 = vsel %vm350_vm3, %v348_v11, %v349_v22  ;;  %v355_v30 = vsel %vm350_vm3, %v349_v22, %v345_v56 }
  0xfe   :  { %v405_v32 = vmul.f32 %v1571_v26, %v1571_v26  ;;  %v360_v33 = vadd.f32 %v355_v30, %v251_v24  ;;  %v359_v34 = vadd.f32 %v351_v29, %v246_v23  ;;  %v342_v35 = vpop.f32.mrf.mxu0  ;;  %v394_v39 = vadd.f32 %v393_v31, %v1571_v26 }
 0x100   :  { %v1589_v40 = vmul.f32 %v1583_v36, %v360_v33  ;;  %v1592_v41 = vmul.f32 %v1585_v37, %v359_v34  ;;  %v1235_v43 = vpop.f32.mrf.mxu0  ;;  %v409_v44 = vadd.f32 %v408_v38, %v405_v32 }
 0x102   :  { %v395_v45 = vadd.f32 %v394_v39, %v1592_v41  ;;  %v406_v46 = vmul.f32 %v1592_v41, %v1592_v41  ;;  %v407_v50 = vmul.f32 %v1589_v40, %v1589_v40 }
 0x104   :  { %v410_v48 = vadd.f32 %v409_v44, %v406_v46  ;;  %v396_v49 = vadd.f32 %v395_v45, %v1589_v40  ;;  %v1347_v44 = vld [vmem:[%s1854_s2 + $0x38] sm:$0xff]   ;;  %v1349_v46 = vld [vmem:[%s1854_s2 + $0x30] sm:$0xff]  }
 0x105   :  { %v1348_v45 = vld [vmem:[%s1854_s2 + $0x78] sm:$0xff]   ;;  %1237 = vmatpush3.bf16.msra.mxu1 %v1347_v44  ;;  %v1366_v44 = vld [vmem:[%s1854_s2 + $0xa0] sm:$0xff]  }
 0x106   :  { %v397_v51 = vrot.slane %v396_v49, 4  ;;  %v411_v52 = vadd.f32 %v410_v48, %v407_v50  ;;  %1265 = vmatpush3.bf16.msra.mxu0 %v1348_v45  ;;  %1238 = vmatprep.subr.bf16.mxu1 %v1375_v0  ;;  %v1350_v48 = vld [vmem:[%s1854_s2 + $0x70] sm:$0xff]   ;;  %v1352_v50 = vld [vmem:[%s1854_s2 + $0x68] sm:$0xff]  }
 0x107   :  { %1266 = vmatprep.subr.bf16.mxu0 %v1375_v0 }
 0x108   :  { %v398_v53 = vadd.f32 %v397_v51, %v396_v49  ;;  %v412_v54 = vrot.slane %v411_v52, 4  ;;  %v1351_v49 = vld [vmem:[%s1854_s2 + $0x28] sm:$0xff]   ;;  %v1353_v51 = vld [vmem:[%s1854_s2 + $0x20] sm:$0xff]  }
 0x109   :  { %1239 = vmatpush3.bf16.msra.mxu1 %v1349_v46  ;;  %v1367_v46 = vld [vmem:[%s1854_s2 + $0x98] sm:$0xff]  }
 0x10a   :  { %v399_v55 = vrot.slane %v398_v53, 2  ;;  %v413_v56 = vadd.f32 %v412_v54, %v411_v52  ;;  %1267 = vmatpush3.bf16.msra.mxu0 %v1350_v48  ;;  %1240 = vmatprep.subr.bf16.mxu1 %v1375_v0 }
 0x10b   :  { %1268 = vmatprep.subr.bf16.mxu0 %v1375_v0 }
 0x10c   :  { %v400_v57 = vadd.f32 %v399_v55, %v398_v53  ;;  %v414_v58 = vrot.slane %v413_v56, 2  ;;  %v1354_v53 = vld [vmem:[%s1854_s2 + $0x60] sm:$0xff]   ;;  %v1355_v55 = vld [vmem:[%s1854_s2 + $0x18] sm:$0xff]  }
 0x10d   :  { %1241 = vmatpush3.bf16.msra.mxu1 %v1351_v49  ;;  %v1368_v49 = vld [vmem:[%s1854_s2 + $0x90] sm:$0xff]  }
 0x10e   :  { %v401_v59 = vrot.slane %v400_v57, 1  ;;  %v415_v61 = vadd.f32 %v414_v58, %v413_v56  ;;  %1269 = vmatpush3.bf16.msra.mxu0 %v1352_v50  ;;  %1242 = vmatprep.subr.bf16.mxu1 %v1375_v0  ;;  %v1356_v56 = vld [vmem:[%s1854_s2 + $0x58] sm:$0xff]   ;;  %v1358_v58 = vld [vmem:[%s1854_s2 + $0x50] sm:$0xff]   ;;  %v1369_v50 = vld [vmem:[%s1854_s2 + $0x88] sm:$0xff]  }
 0x10f   :  { %1270 = vmatprep.subr.bf16.mxu0 %v1375_v0 }
 0x110   :  { %v402_v62 = vadd.f32 %v401_v59, %v400_v57  ;;  %v416_v63 = vrot.slane %v415_v61, 1  ;;  %v1357_v57 = vld [vmem:[%s1854_s2 + $0x10] sm:$0xff]   ;;  %v1359_v59 = vld [vmem:[%s1854_s2 + $0x8] sm:$0xff]  }
 0x111   :  { %1243 = vmatpush3.bf16.msra.mxu1 %v1353_v51  ;;  %v1370_v51 = vld [vmem:[%s1854_s2 + $0x80] sm:$0xff]  }
 0x112   :  { %418 = vrot.lane.b32.xlu1 %v402_v62, %s1378_s0  ;;  %v417_v1 = vadd.f32 %v416_v63, %v415_v61  ;;  %1271 = vmatpush3.bf16.msra.mxu0 %v1354_v53  ;;  %v1360_v61 = vld [vmem:[%s1854_s2 + $0x48] sm:$0xff]   ;;  %v1361_v63 = vld [vmem:[%s1854_s2] sm:$0xff]  }
 0x113   :  { %1244 = vmatprep.subr.bf16.mxu1 %v1375_v0  ;;  %1272 = vmatprep.subr.bf16.mxu0 %v1375_v0 }
 0x114   :  { %430 = vrot.lane.b32.xlu0 %v417_v1, %s1378_s0 }
 0x115   :  { %1245 = vmatpush3.bf16.msra.mxu1 %v1355_v55 }
 0x116   :  { %1273 = vmatpush3.bf16.msra.mxu0 %v1356_v56  ;;  %1246 = vmatprep.subr.bf16.mxu1 %v1375_v0 }
 0x117   :  { %1274 = vmatprep.subr.bf16.mxu0 %v1375_v0 }
 0x119   :  { %1247 = vmatpush3.bf16.msra.mxu1 %v1357_v57 }
 0x11a   :  { %1275 = vmatpush3.bf16.msra.mxu0 %v1358_v58  ;;  %1248 = vmatprep.subr.bf16.mxu1 %v1375_v0 }
 0x11b   :  { %1276 = vmatprep.subr.bf16.mxu0 %v1375_v0 }
 0x11d   :  { %1249 = vmatpush3.bf16.msra.mxu1 %v1359_v59 }
 0x11e   :  { %1277 = vmatpush3.bf16.msra.mxu0 %v1360_v61  ;;  %1250 = vmatprep.subr.bf16.mxu1 %v1375_v0 }
 0x11f   :  { %1278 = vmatprep.subr.bf16.mxu0 %v1375_v0 }
 0x121   :  { %1251 = vmatpush3.bf16.msra.mxu1 %v1361_v63 }
 0x122   :  { %1292 = vmatprep.subr.bf16.mxu1 %v1375_v0 }
 0x184   :  { %v419_v2 = vpop.permute.xlu1 %418 }
 0x185   :  { %v420_v3 = vadd.f32 %v419_v2, %v402_v62  ;;  %v1362_v2 = vld [vmem:[%s1854_s2 + $0x40] sm:$0xff]  }
 0x186   :  { %v431_v4 = vpop.permute.xlu0 %430  ;;  %1279 = vmatpush3.bf16.msra.mxu0 %v1362_v2 }
 0x187   :  { %v432_v5 = vadd.f32 %v431_v4, %v417_v1  ;;  %421 = vrot.lane.b32.xlu1 %v420_v3, %s1379_s1  ;;  %v391_v4 = vld [vmem:[%s1855_s3] sm:$0x1] }
 0x189   :  { %433 = vrot.lane.b32.xlu0 %v432_v5, %s1379_s1 }
 0x1f9   :  { %v422_v6 = vpop.permute.xlu1 %421 }
 0x1fa   :  { %v423_v7 = vadd.f32 %v422_v6, %v420_v3  ;;  %v1691_v6 = vsub.s32 0, %v1536_v47 }
 0x1fb   :  { %v434_v8 = vpop.permute.xlu0 %433 }
 0x1fc   :  { %v435_v9 = vadd.f32 %v434_v8, %v432_v5  ;;  %424 = vrot.lane.b32.xlu1 %v423_v7, %s1380_s22 }
 0x1fe   :  { %436 = vrot.lane.b32.xlu0 %v435_v9, %s1380_s22 }
 0x26e   :  { %v425_v11 = vpop.permute.xlu1 %424 }
 0x26f   :  { %v426_v12 = vadd.f32 %v425_v11, %v423_v7  ;;  %v392_v11 = vld [vmem:[%s1856_s4] sm:$0x1] }
 0x270   :  { %v437_v14 = vpop.permute.xlu0 %436 }
 0x271   :  { %v438_v15 = vadd.f32 %v437_v14, %v435_v9  ;;  %427 = vrot.lane.b32.xlu1 %v426_v12, %s1381_s23 }
 0x273   :  { %439 = vrot.lane.b32.xlu0 %v438_v15, %s1381_s23 }
 0x2e3   :  { %v428_v18 = vpop.permute.xlu1 %427 }
 0x2e4   :  { %v429_v20 = vadd.f32 %v428_v18, %v426_v12 }
 0x2e5   :  { %v440_v21 = vpop.permute.xlu0 %439 }
 0x2e6   :  { %v442_v22 = vmul.f32 0.001953125, %v429_v20  ;;  %v441_v23 = vadd.f32 %v440_v21, %v438_v15 }
 0x2e8   :  { %v444_v24 = vmul.f32 %v442_v22, %v442_v22  ;;  %v443_v25 = vmul.f32 0.001953125, %v441_v23  ;;  %v448_v27 = vsel %vm37_vm4, %v442_v22, 0.0 }
 0x2e9   :  { %449 = vrot.lane.b32.xlu0 %v448_v27, %s1382_s24 }
 0x2ea   :  { %v445_v28 = vsub.f32 %v443_v25, %v444_v24 }
 0x2ec   :  { %v446_v29 = vadd.f32 1e-05, %v445_v28 }
 0x2ee   :  { %1371 = vrsqrt.f32 %v446_v29 }
 0x2fb   :  { %v1372_v42 = vpop.eup %1371 }
 0x2fc   :  { %v461_v30 = vsel %vm37_vm4, %v1372_v42, 0.0 }
 0x2fd   :  { %462 = vrot.lane.b32.xlu1 %v461_v30, %s1382_s24 }
 0x35b   :  { %v450_v31 = vpop.permute.xlu0 %449 }
 0x35c   :  { %v451_v32 = vadd.f32 %v450_v31, %v448_v27 }
 0x35e   :  { %452 = vrot.lane.b32.xlu0 %v451_v32, %s1383_s25 }
 0x36f   :  { %v463_v33 = vpop.permute.xlu1 %462 }
 0x370   :  { %v464_v34 = vadd.f32 %v463_v33, %v461_v30 }
 0x372   :  { %465 = vrot.lane.b32.xlu1 %v464_v34, %s1383_s25 }
 0x3d0   :  { %v453_v35 = vpop.permute.xlu0 %452 }
 0x3d1   :  { %v454_v38 = vadd.f32 %v453_v35, %v451_v32 }
 0x3d3   :  { %455 = vrot.lane.b32.xlu0 %v454_v38, %s1384_s26 }
 0x3e4   :  { %v466_v39 = vpop.permute.xlu1 %465 }
 0x3e5   :  { %v467_v43 = vadd.f32 %v466_v39, %v464_v34 }
 0x3e7   :  { %468 = vrot.lane.b32.xlu1 %v467_v43, %s1384_s26 }
 0x445   :  { %v456_v52 = vpop.permute.xlu0 %455 }
 0x446   :  { %v457_v54 = vadd.f32 %v456_v52, %v454_v38 }
 0x448   :  { %458 = vrot.lane.b32.xlu0 %v457_v54, %s1381_s23 }
 0x459   :  { %v469_v62 = vpop.permute.xlu1 %468 }
 0x45a   :  { %v470_v1 = vadd.f32 %v469_v62, %v467_v43 }
 0x45c   :  { %471 = vrot.lane.b32.xlu1 %v470_v1, %s1381_s23 }
 0x4ba   :  { %v459_v3 = vpop.permute.xlu0 %458 }
 0x4bb   :  { %v460_v8 = vadd.f32 %v459_v3, %v457_v54 }
 0x4ce   :  { %v472_v5 = vpop.permute.xlu1 %471 }
 0x4cf   :  { %v473_v7 = vadd.f32 %v472_v5, %v470_v1 }
 0x4d1   :  { %v474_v9 = vmul.f32 %v473_v7, %v391_v4 }
 0x4d3   :  { %v475_v12 = vmul.f32 %v474_v9, %v460_v8  ;;  %v481_v14 = vrot.slane %v474_v9, %v1691_v6 }
 0x4d5   :  { %v476_v15 = vsub.f32 %v392_v11, %v475_v12  ;;  %v483_v18 = vmul.f32 %v481_v14, %v1562_v17  ;;  %v484_v20 = vmul.f32 %v481_v14, %v1555_v13  ;;  %v485_v24 = vmul.f32 %v481_v14, %v1571_v26  ;;  %v1363_v13 = vld [vmem:[%s1854_s2 + $0xb8] sm:$0xff]  }
 0x4d6   :  { %v486_v25 = vmul.f32 %v481_v14, %v1592_v41  ;;  %v487_v26 = vmul.f32 %v481_v14, %v1589_v40  ;;  %v1364_v41 = vld [vmem:[%s1854_s2 + $0xb0] sm:$0xff]   ;;  %v1365_v40 = vld [vmem:[%s1854_s2 + $0xa8] sm:$0xff]  }
 0x4d7   :  { %v492_v21 = vrot.slane %v476_v15, %v1691_v6 }
 0x4d9   :  { %v494_v22 = vadd.f32 %v492_v21, %v483_v18  ;;  %v495_v23 = vadd.f32 %v492_v21, %v484_v20  ;;  %v496_v29 = vadd.f32 %v492_v21, %v485_v24  ;;  %v497_v42 = vadd.f32 %v492_v21, %v486_v25 }
 0x4da   :  { %v498_v38 = vadd.f32 %v492_v21, %v487_v26 }
 0x4db   :  { %v499_v27 = vmax.f32 %v494_v22, 0.0  ;;  %v500_v28 = vmax.f32 %v495_v23, 0.0  ;;  %v501_v32 = vmax.f32 %v496_v29, 0.0  ;;  %v502_v33 = vmax.f32 %v497_v42, 0.0 }
 0x4dc   :  { %v503_v43 = vmax.f32 %v498_v38, 0.0 }
 0x4dd   :  { %v504_v30 = vmul.f32 %v499_v27, %v1544_v60  ;;  %v505_v31 = vmul.f32 %v500_v28, %v1552_v10  ;;  %v506_v34 = vmul.f32 %v501_v32, %v1566_v19  ;;  %v507_v35 = vmul.f32 %v502_v33, %v1585_v37 }
 0x4de   :  { %v508_v45 = vmul.f32 %v503_v43, %v1583_v36 }
 0x4df   :  { %v509_v17 = vpack.c.bf16 %v505_v31, %v504_v30  ;;  %v510_v39 = vpack.c.bf16 %v507_v35, %v506_v34 }
 0x4e0   :  { %v511_v48 = vpack.c.bf16 %v508_v45, %v508_v45 }
 0x4e1   :  { %1253 = vmatmul.mubr.bf16.vlgmr.msra.gmra.mxu1 %v509_v17  ;;  %1281 = vmatmul.mubr.bf16.vlgmr.msra.gmra.mxu0 %v509_v17 }
 0x4e2   :  { %1293 = vmatpush3.bf16.msra.mxu1 %v1363_v13  ;;  %1256 = vmatprep.mubr.msk.bf16.mxu1 %vm1376_vm0, %v1375_v0 }
 0x4e3   :  { %1294 = vmatprep.subr.bf16.mxu1 %v1375_v0  ;;  %1284 = vmatprep.mubr.msk.bf16.mxu0 %vm1376_vm0, %v1375_v0 }
 0x4e6   :  { %1295 = vmatpush3.bf16.msra.mxu1 %v1364_v41 }
 0x4e7   :  { %1296 = vmatprep.subr.bf16.mxu1 %v1375_v0 }
 0x4e9   :  { %1257 = vmatmul.mubr.bf16.gmra.mxu1 %v510_v39  ;;  %1285 = vmatmul.mubr.bf16.gmra.mxu0 %v510_v39 }
 0x4ea   :  { %1297 = vmatpush3.bf16.msra.mxu1 %v1365_v40  ;;  %1260 = vmatprep.mubr.msk.bf16.mxu1 %vm1376_vm0, %v1375_v0 }
 0x4eb   :  { %1298 = vmatprep.subr.bf16.mxu1 %v1375_v0  ;;  %1288 = vmatprep.mubr.msk.bf16.mxu0 %vm1376_vm0, %v1375_v0 }
 0x4ee   :  { %1299 = vmatpush3.bf16.msra.mxu1 %v1366_v44 }
 0x4ef   :  { %1300 = vmatprep.subr.bf16.mxu1 %v1375_v0 }
 0x4f1   :  { %1261 = vmatmul.mubr.bf16.gmra.mxu1 %v511_v48  ;;  %1289 = vmatmul.mubr.bf16.gmra.mxu0 %v511_v48 }
 0x4f2   :  { %1301 = vmatpush3.bf16.msra.mxu1 %v1367_v46  ;;  %1308 = vmatprep.mubr.msk.bf16.mxu1 %vm1376_vm0, %v1375_v0 }
 0x4f3   :  { %1302 = vmatprep.subr.bf16.mxu1 %v1375_v0 }
 0x4f6   :  { %1303 = vmatpush3.bf16.msra.mxu1 %v1368_v49 }
 0x4f7   :  { %1304 = vmatprep.subr.bf16.mxu1 %v1375_v0 }
 0x4fa   :  { %1305 = vmatpush3.bf16.msra.mxu1 %v1369_v50 }
 0x4fb   :  { %1306 = vmatprep.subr.bf16.mxu1 %v1375_v0 }
 0x4fe   :  { %1307 = vmatpush3.bf16.msra.mxu1 %v1370_v51 }
 0x501   :  { %1309 = vmatmul.mubr.bf16.vlgmr.msra.gmra.mxu1 %v509_v17 }
 0x502   :  { %1312 = vmatprep.mubr.msk.bf16.mxu1 %vm1376_vm0, %v1375_v0 }
 0x509   :  { %1313 = vmatmul.mubr.bf16.gmra.mxu1 %v510_v39 }
 0x50a   :  { %1316 = vmatprep.mubr.msk.bf16.mxu1 %vm1376_vm0, %v1375_v0 }
 0x511   :  { %1317 = vmatmul.mubr.bf16.gmra.mxu1 %v511_v48 }
 0x5a1   :  { %v627_v52 = vpop.f32.mrf.mxu1  ;;  %v741_v53 = vpop.f32.mrf.mxu0 }
 0x5a2   :  { %v649_v23 = vrot.slane %v627_v52, 7 }
 0x5a3   :  { %v1254_v54 = vpop.f32.mrf.mxu1  ;;  %v1282_v55 = vpop.f32.mrf.mxu0 }
 0x5a5   :  { %v630_v56 = vpop.f32.mrf.mxu1  ;;  %v744_v57 = vpop.f32.mrf.mxu0 }
 0x5a6   :  { %v650_v22 = vrot.slane %v630_v56, 7 }
 0x5a7   :  { %v1255_v58 = vpop.f32.mrf.mxu1  ;;  %v1283_v59 = vpop.f32.mrf.mxu0 }
 0x5a8   :  { %v657_v42 = vsel %vm170_vm2, %v649_v23, %v650_v22 }
 0x5a9   :  { %v635_v61 = vpop.f32.mrf.mxu1  ;;  %v749_v62 = vpop.f32.mrf.mxu0  ;;  %v745_v33 = vadd.f32 %v744_v57, %v657_v42 }
 0x5aa   :  { %v651_v30 = vrot.slane %v635_v61, 7 }
 0x5ab   :  { %v1258_v63 = vpop.f32.mrf.mxu1  ;;  %v1286_v1 = vpop.f32.mrf.mxu0 }
 0x5ac   :  { %v656_v41 = vsel %vm170_vm2, %v650_v22, %v651_v30 }
 0x5ad   :  { %v638_v2 = vpop.f32.mrf.mxu1  ;;  %v752_v3 = vpop.f32.mrf.mxu0  ;;  %v750_v44 = vadd.f32 %v749_v62, %v656_v41 }
 0x5ae   :  { %v652_v34 = vrot.slane %v638_v2, 7 }
 0x5af   :  { %v1259_v4 = vpop.f32.mrf.mxu1  ;;  %v1287_v5 = vpop.f32.mrf.mxu0 }
 0x5b0   :  { %v655_v48 = vsel %vm170_vm2, %v651_v30, %v652_v34 }
 0x5b1   :  { %v643_v7 = vpop.f32.mrf.mxu1  ;;  %v757_v8 = vpop.f32.mrf.mxu0  ;;  %v753_v55 = vadd.f32 %v752_v3, %v655_v48 }
 0x5b2   :  { %v653_v20 = vrot.slane %v643_v7, 7 }
 0x5b3   :  { %v1262_v0 = vpop.f32.mrf.mxu1  ;;  %v1290_v9 = vpop.f32.mrf.mxu0 }
 0x5b4   :  { %v658_v27 = vsel %vm170_vm2, %v653_v20, %v649_v23  ;;  %v654_v49 = vsel %vm170_vm2, %v652_v34, %v653_v20 }
 0x5b5   :  { %v646_v11 = vpop.f32.mrf.mxu1  ;;  %v760_v12 = vpop.f32.mrf.mxu0  ;;  %v742_v17 = vadd.f32 %v741_v53, %v658_v27  ;;  %v758_v56 = vadd.f32 %v757_v8, %v654_v49 }
 0x5b7   :  { %v1263_v14 = vpop.f32.mrf.mxu1  ;;  %v1291_v15 = vpop.f32.mrf.mxu0 }
 0x5c1   :  { %v862_v18 = vpop.f32.mrf.mxu1 }
 0x5c2   :  { %v884_v28 = vrot.slane %v862_v18, 1 }
 0x5c3   :  { %v1310_v21 = vpop.f32.mrf.mxu1 }
 0x5c5   :  { %v865_v24 = vpop.f32.mrf.mxu1 }
 0x5c6   :  { %v885_v25 = vrot.slane %v865_v24, 1 }
 0x5c7   :  { %v1311_v29 = vpop.f32.mrf.mxu1 }
 0x5c8   :  { %v892_v31 = vsel %vm350_vm3, %v884_v28, %v885_v25 }
 0x5c9   :  { %v870_v13 = vpop.f32.mrf.mxu1  ;;  %v894_v35 = vadd.f32 %v892_v31, %v742_v17 }
 0x5ca   :  { %v886_v32 = vrot.slane %v870_v13, 1 }
 0x5cb   :  { %v1314_v26 = vpop.f32.mrf.mxu1  ;;  %v1771_v50 = vmul.f32 %v894_v35, %v1544_v60 }
 0x5cc   :  { %v891_v38 = vsel %vm350_vm3, %v885_v25, %v886_v32 }
 0x5cd   :  { %v895_v40 = vadd.f32 %v891_v38, %v745_v33  ;;  %v873_v39 = vpop.f32.mrf.mxu1  ;;  %v916_v59 = vmul.f32 %v1771_v50, %v1771_v50 }
 0x5ce   :  { %v887_v43 = vrot.slane %v873_v39, 1 }
 0x5cf   :  { %v1764_v45 = vmul.f32 %v895_v40, %v1552_v10  ;;  %v1315_v46 = vpop.f32.mrf.mxu1 }
 0x5d0   :  { %v890_v51 = vsel %vm350_vm3, %v886_v32, %v887_v43 }
 0x5d1   :  { %v896_v52 = vadd.f32 %v890_v51, %v750_v44  ;;  %v878_v53 = vpop.f32.mrf.mxu1  ;;  %v917_v10 = vmul.f32 %v1764_v45, %v1764_v45  ;;  %v906_v62 = vadd.f32 %v1764_v45, %v1771_v50 }
 0x5d2   :  { %v888_v54 = vrot.slane %v878_v53, 1 }
 0x5d3   :  { %v1778_v57 = vmul.f32 %v896_v52, %v1566_v19  ;;  %v1318_v58 = vpop.f32.mrf.mxu1  ;;  %v921_v3 = vadd.f32 %v917_v10, %v916_v59 }
 0x5d4   :  { %v889_v60 = vsel %vm350_vm3, %v887_v43, %v888_v54  ;;  %v893_v61 = vsel %vm350_vm3, %v888_v54, %v884_v28 }
 0x5d5   :  { %v918_v63 = vmul.f32 %v1778_v57, %v1778_v57  ;;  %v897_v1 = vadd.f32 %v889_v60, %v753_v55  ;;  %v898_v2 = vadd.f32 %v893_v61, %v758_v56  ;;  %v881_v19 = vpop.f32.mrf.mxu1  ;;  %v907_v4 = vadd.f32 %v906_v62, %v1778_v57 }
 0x5d7   :  { %v1792_v5 = vmul.f32 %v897_v1, %v1585_v37  ;;  %v1795_v7 = vmul.f32 %v898_v2, %v1583_v36  ;;  %v1319_v47 = vpop.f32.mrf.mxu1  ;;  %v922_v9 = vadd.f32 %v921_v3, %v918_v63 }
 0x5d9   :  { %v919_v8 = vmul.f32 %v1792_v5, %v1792_v5  ;;  %v908_v0 = vadd.f32 %v907_v4, %v1792_v5  ;;  %v920_v12 = vmul.f32 %v1795_v7, %v1795_v7  ;;  %v904_v4 = vld [vmem:[%s1857_s5] sm:$0x1] }
 0x5db   :  { %v909_v11 = vadd.f32 %v908_v0, %v1795_v7  ;;  %v923_v14 = vadd.f32 %v922_v9, %v919_v8 }
 0x5dd   :  { %v910_v15 = vrot.slane %v909_v11, 4  ;;  %v924_v18 = vadd.f32 %v923_v14, %v920_v12 }
 0x5df   :  { %v911_v37 = vadd.f32 %v910_v15, %v909_v11  ;;  %v925_v20 = vrot.slane %v924_v18, 4  ;;  %v905_v11 = vld [vmem:[%s1858_s6] sm:$0x1] }
 0x5e1   :  { %v912_v21 = vrot.slane %v911_v37, 2  ;;  %v926_v36 = vadd.f32 %v925_v20, %v924_v18 }
 0x5e3   :  { %v913_v22 = vadd.f32 %v912_v21, %v911_v37  ;;  %v927_v23 = vrot.slane %v926_v36, 2 }
 0x5e5   :  { %v914_v24 = vrot.slane %v913_v22, 1  ;;  %v928_v25 = vadd.f32 %v927_v23, %v926_v36 }
 0x5e7   :  { %v915_v27 = vadd.f32 %v914_v24, %v913_v22  ;;  %v929_v28 = vrot.slane %v928_v25, 1 }
 0x5e9   :  { %931 = vrot.lane.b32.xlu1 %v915_v27, %s1378_s0  ;;  %v930_v29 = vadd.f32 %v929_v28, %v928_v25 }
 0x5eb   :  { %943 = vrot.lane.b32.xlu0 %v930_v29, %s1378_s0 }
 0x65b   :  { %v932_v42 = vpop.permute.xlu1 %931 }
 0x65c   :  { %v933_v30 = vadd.f32 %v932_v42, %v915_v27 }
 0x65d   :  { %v944_v31 = vpop.permute.xlu0 %943 }
 0x65e   :  { %v945_v13 = vadd.f32 %v944_v31, %v930_v29  ;;  %934 = vrot.lane.b32.xlu1 %v933_v30, %s1379_s1 }
 0x660   :  { %946 = vrot.lane.b32.xlu0 %v945_v13, %s1379_s1 }
 0x6d0   :  { %v935_v17 = vpop.permute.xlu1 %934 }
 0x6d1   :  { %v936_v32 = vadd.f32 %v935_v17, %v933_v30 }
 0x6d2   :  { %v947_v33 = vpop.permute.xlu0 %946 }
 0x6d3   :  { %v948_v26 = vadd.f32 %v947_v33, %v945_v13  ;;  %937 = vrot.lane.b32.xlu1 %v936_v32, %s1380_s22 }
 0x6d5   :  { %949 = vrot.lane.b32.xlu0 %v948_v26, %s1380_s22 }
 0x745   :  { %v938_v41 = vpop.permute.xlu1 %937 }
 0x746   :  { %v939_v34 = vadd.f32 %v938_v41, %v936_v32 }
 0x747   :  { %v950_v35 = vpop.permute.xlu0 %949 }
 0x748   :  { %v951_v38 = vadd.f32 %v950_v35, %v948_v26  ;;  %940 = vrot.lane.b32.xlu1 %v939_v34, %s1381_s23 }
 0x74a   :  { %952 = vrot.lane.b32.xlu0 %v951_v38, %s1381_s23 }
 0x7ba   :  { %v941_v40 = vpop.permute.xlu1 %940 }
 0x7bb   :  { %v942_v39 = vadd.f32 %v941_v40, %v939_v34 }
 0x7bc   :  { %v953_v43 = vpop.permute.xlu0 %952 }
 0x7bd   :  { %v955_v44 = vmul.f32 0.001953125, %v942_v39  ;;  %v954_v46 = vadd.f32 %v953_v43, %v951_v38 }
 0x7bf   :  { %v957_v48 = vmul.f32 %v955_v44, %v955_v44  ;;  %v956_v49 = vmul.f32 0.001953125, %v954_v46  ;;  %v961_v51 = vsel %vm37_vm4, %v955_v44, 0.0 }
 0x7c0   :  { %962 = vrot.lane.b32.xlu0 %v961_v51, %s1382_s24 }
 0x7c1   :  { %v958_v52 = vsub.f32 %v956_v49, %v957_v48 }
 0x7c3   :  { %v959_v53 = vadd.f32 1e-05, %v958_v52 }
 0x7c5   :  { %1373 = vrsqrt.f32 %v959_v53 }
 0x7d2   :  { %v1374_v54 = vpop.eup %1373 }
 0x7d3   :  { %v974_v55 = vsel %vm37_vm4, %v1374_v54, 0.0 }
 0x7d4   :  { %975 = vrot.lane.b32.xlu1 %v974_v55, %s1382_s24 }
 0x832   :  { %v963_v56 = vpop.permute.xlu0 %962 }
 0x833   :  { %v964_v10 = vadd.f32 %v963_v56, %v961_v51 }
 0x835   :  { %965 = vrot.lane.b32.xlu0 %v964_v10, %s1383_s25 }
 0x846   :  { %v976_v58 = vpop.permute.xlu1 %975 }
 0x847   :  { %v977_v59 = vadd.f32 %v976_v58, %v974_v55 }
 0x849   :  { %978 = vrot.lane.b32.xlu1 %v977_v59, %s1383_s25 }
 0x8a7   :  { %v966_v60 = vpop.permute.xlu0 %965 }
 0x8a8   :  { %v967_v61 = vadd.f32 %v966_v60, %v964_v10 }
 0x8aa   :  { %968 = vrot.lane.b32.xlu0 %v967_v61, %s1384_s26 }
 0x8bb   :  { %v979_v62 = vpop.permute.xlu1 %978 }
 0x8bc   :  { %v980_v63 = vadd.f32 %v979_v62, %v977_v59 }
 0x8be   :  { %981 = vrot.lane.b32.xlu1 %v980_v63, %s1384_s26 }
 0x91c   :  { %v969_v16 = vpop.permute.xlu0 %968 }
 0x91d   :  { %v970_v1 = vadd.f32 %v969_v16, %v967_v61 }
 0x91f   :  { %971 = vrot.lane.b32.xlu0 %v970_v1, %s1381_s23 }
 0x930   :  { %v982_v2 = vpop.permute.xlu1 %981 }
 0x931   :  { %v983_v19 = vadd.f32 %v982_v2, %v980_v63 }
 0x933   :  { %984 = vrot.lane.b32.xlu1 %v983_v19, %s1381_s23 }
 0x991   :  { %v972_v3 = vpop.permute.xlu0 %971 }
 0x992   :  { %v973_v0 = vadd.f32 %v972_v3, %v970_v1 }
 0x9a5   :  { %v985_v47 = vpop.permute.xlu1 %984 }
 0x9a6   :  { %v986_v8 = vadd.f32 %v985_v47, %v983_v19 }
 0x9a8   :  { %v987_v9 = vmul.f32 %v986_v8, %v904_v4 }
 0x9aa   :  { %v988_v12 = vmul.f32 %v987_v9, %v973_v0  ;;  %v994_v14 = vrot.slane %v987_v9, %v1691_v6 }
 0x9ac   :  { %v989_v15 = vsub.f32 %v905_v11, %v988_v12  ;;  %v996_v18 = vmul.f32 %v994_v14, %v1771_v50  ;;  %v997_v37 = vmul.f32 %v994_v14, %v1764_v45  ;;  %v998_v20 = vmul.f32 %v994_v14, %v1778_v57 }
 0x9ad   :  { %v999_v21 = vmul.f32 %v994_v14, %v1792_v5  ;;  %v1000_v22 = vmul.f32 %v994_v14, %v1795_v7 }
 0x9ae   :  { %v1005_v36 = vrot.slane %v989_v15, %v1691_v6 }
 0x9b0   :  { %v1007_v23 = vadd.f32 %v1005_v36, %v996_v18  ;;  %v1008_v24 = vadd.f32 %v1005_v36, %v997_v37  ;;  %v1009_v25 = vadd.f32 %v1005_v36, %v998_v20  ;;  %v1010_v27 = vadd.f32 %v1005_v36, %v999_v21 }
 0x9b1   :  { %v1011_v28 = vadd.f32 %v1005_v36, %v1000_v22 }
 0x9b2   :  { %v1012_v29 = vmax.f32 %v1007_v23, 0.0  ;;  %v1013_v42 = vmax.f32 %v1008_v24, 0.0  ;;  %v1014_v30 = vmax.f32 %v1009_v25, 0.0  ;;  %v1015_v31 = vmax.f32 %v1010_v27, 0.0 }
 0x9b3   :  { %v1016_v50 = vmax.f32 %v1011_v28, 0.0 }
 0x9b4   :  { %1017 = vst [vmem:[%s1859_s8] sm:$0xff] %v1012_v29  ;;  %1018 = vst [vmem:[%s1859_s8 + $0x8] sm:$0xff] %v1013_v42 }
 0x9b5   :  { %1019 = vst [vmem:[%s1859_s8 + $0x10] sm:$0xff] %v1014_v30  ;;  %1020 = vst [vmem:[%s1859_s8 + $0x18] sm:$0xff] %v1015_v31 }
 0x9b6   :  { %1021 = vst [vmem:[%s1859_s8 + $0x20] sm:$0xff] %v1016_v50 }

</bundles_post_ra>
